<compile_context>
chip_gen: v5e
topology: v5e:2x2
jax: 0.10.0
libtpu: 0.0.40
codegen_flags: <defaults>
</compile_context>

<pallas_src>
import functools

import jax
import jax.numpy as jnp
from jax.experimental import pallas as pl
from jax.experimental.pallas import tpu as pltpu


# ----------------------------------------------------------------------------- helpers
def _round_up(v, m):
    return ((v + m - 1) // m) * m


def _cdiv(a, b):
    return (a + b - 1) // b


def _vmem_footprint(tm, in_f, hidden_p, out_p, r, xsz, wsz):
    """Rough per-step VMEM bytes: io tiles (double-buffered) + weights (single) + f32 temps."""
    io = 2 * tm * in_f * xsz + 2 * tm * out_p * xsz
    weights = wsz * (in_f * (hidden_p + r) + r * hidden_p
                     + hidden_p * (out_p + r) + r * out_p)
    biases = 4 * (hidden_p + out_p)
    temps = 4 * tm * (2 * hidden_p + 2 * out_p + 2 * r)     # y1, h, y2, out in f32
    return io + weights + biases + temps


def _vmem_budget_bytes():
    """Physical-VMEM-aware scoped limit (v7x has 64 MiB/TC, v5e/v6e have 128 MiB)."""
    try:
        cap = int(getattr(pltpu.get_tpu_info(), "vmem_capacity_bytes", 64 << 20))
    except Exception:
        cap = 64 << 20                                        # conservative fallback
    return min(cap - (8 << 20), 100 << 20)


# ----------------------------------------------------------------------------- kernel
def _fused_lora_mlp_kernel(x_ref, wcat1_ref, b1_ref, bt1_ref,
                           wcat2_ref, b2_ref, bt2_ref, o_ref,
                           *, hidden_p, out_p):
    """One row tile: out = fc2(relu(fc1(x))), LoRA-A fused into each base matmul."""
    cdt = wcat1_ref.dtype                                     # MXU input dtype
    x = x_ref[...].astype(cdt)

    # ---- fc1: one MXU pass over [W1^T | A1^T] (lane-aligned split at hidden_p) ----
    y1 = jnp.dot(x, wcat1_ref[...], preferred_element_type=jnp.float32)
    h = y1[:, :hidden_p] + b1_ref[...] + jnp.dot(
        y1[:, hidden_p:].astype(bt1_ref.dtype), bt1_ref[...],
        preferred_element_type=jnp.float32)
    h = jnp.maximum(h, 0.0)                                   # ReLU; drop1/norm are no-ops

    # ---- fc2: one MXU pass over [W2^T | A2^T] -------------------------------------
    h = h.astype(cdt)
    y2 = jnp.dot(h, wcat2_ref[...], preferred_element_type=jnp.float32)
    out = y2[:, :out_p] + b2_ref[...] + jnp.dot(
        y2[:, out_p:].astype(bt2_ref.dtype), bt2_ref[...],
        preferred_element_type=jnp.float32)
    o_ref[...] = out.astype(o_ref.dtype)                      # drop2 is a no-op


# ----------------------------------------------------------------------------- wrapper
def prepare_params(params, *, weight_dtype=jnp.bfloat16):
    """One-time weight layout: transpose + concat [W^T|A^T], pad to lane multiples, cast.

    Do this OUTSIDE the per-step jit so the forward never re-materializes weights in HBM.
    """
    w1, b1, a1, bB1 = params["w1"], params["b1"], params["a1"], params["bB1"]
    w2, b2, a2, bB2 = params["w2"], params["b2"], params["a2"], params["bB2"]
    hidden, in_f = w1.shape
    out_f = w2.shape[0]
    hidden_p = _round_up(hidden, 128)
    out_p = _round_up(out_f, 128)
    wdt = weight_dtype

    w1t = jnp.pad(w1.T, ((0, 0), (0, hidden_p - hidden)))                    # (in, hid_p)
    wcat1 = jnp.concatenate([w1t, a1.T], axis=1).astype(wdt)                 # (in, hid_p+r)
    b1r = jnp.pad(b1, (0, hidden_p - hidden)).reshape(1, hidden_p).astype(jnp.float32)
    bt1 = jnp.pad(bB1.T, ((0, 0), (0, hidden_p - hidden))).astype(wdt)       # (r, hid_p)

    w2t = jnp.pad(w2.T, ((0, hidden_p - hidden), (0, out_p - out_f)))        # (hid_p, out_p)
    a2t = jnp.pad(a2.T, ((0, hidden_p - hidden), (0, 0)))                    # (hid_p, r)
    wcat2 = jnp.concatenate([w2t, a2t], axis=1).astype(wdt)                  # (hid_p, out_p+r)
    b2r = jnp.pad(b2, (0, out_p - out_f)).reshape(1, out_p).astype(jnp.float32)
    bt2 = jnp.pad(bB2.T, ((0, 0), (0, out_p - out_f))).astype(wdt)           # (r, out_p)

    return {"wcat1": wcat1, "b1": b1r, "bt1": bt1,
            "wcat2": wcat2, "b2": b2r, "bt2": bt2}


def lora_mlp_forward(x, prepped, *, out_features, tm_max=None):
    """x: (B, S, in_features) -> (B, S, out_features). Fully fused MLP+LoRA."""
    B, S, in_f = x.shape
    wcat1, b1r, bt1 = prepped["wcat1"], prepped["b1"], prepped["bt1"]
    wcat2, b2r, bt2 = prepped["wcat2"], prepped["b2"], prepped["bt2"]
    hidden_p = b1r.shape[1]
    out_p = b2r.shape[1]
    r = bt1.shape[0]

    xsz = jnp.dtype(x.dtype).itemsize
    wsz = jnp.dtype(wcat1.dtype).itemsize

    budget = _vmem_budget_bytes()
    if tm_max is None:
        tm_max = 512 if budget >= (90 << 20) else 256         # smaller ceiling on 64-MiB VMEM

    # ---- adaptive row tiling: minimal padding, >=2 grid steps for megacore --------
    n = B * S
    n8 = _round_up(n, 8)
    min_tiles = 2 if n8 >= 16 else 1
    n_tiles = max(_cdiv(n8, tm_max), min_tiles)
    tm_eff = _round_up(_cdiv(n8, n_tiles), 8)
    # Shrink the row tile if the VMEM footprint would not fit the budget.
    while tm_eff > 8 and _vmem_footprint(tm_eff, in_f, hidden_p, out_p, r, xsz, wsz) > budget:
        tm_eff = max(8, _round_up(tm_eff // 2, 8))
    grid = _cdiv(n, tm_eff)
    n_pad = grid * tm_eff

    x2d = x.reshape(n, in_f)
    if n_pad != n:
        x2d = jnp.pad(x2d, ((0, n_pad - n), (0, 0)))

    footprint = _vmem_footprint(tm_eff, in_f, hidden_p, out_p, r, xsz, wsz)
    vmem_limit = int(min(budget, max(int(1.25 * footprint), 32 << 20)))

    weight_bytes = wsz * (in_f * (hidden_p + r) + r * hidden_p
                          + hidden_p * (out_p + r) + r * out_p) + 4 * (hidden_p + out_p)
    flops = 2 * n_pad * (in_f * (hidden_p + r) + r * hidden_p
                         + hidden_p * (out_p + r) + r * out_p)
    cost = pl.CostEstimate(
        flops=int(flops),
        transcendentals=0,
        bytes_accessed=int(n_pad * in_f * xsz + n_pad * out_p * xsz + weight_bytes),
    )

    kernel = functools.partial(_fused_lora_mlp_kernel, hidden_p=hidden_p, out_p=out_p)
    const = lambda i: (0, 0)                                   # grid-invariant operands

    out2d = pl.pallas_call(
        kernel,
        out_shape=jax.ShapeDtypeStruct((n_pad, out_p), x.dtype),
        grid_spec=pltpu.PrefetchScalarGridSpec(
            num_scalar_prefetch=0,
            grid=(grid,),
            in_specs=[
                pl.BlockSpec((tm_eff, in_f), lambda i: (i, 0)),                    # x rows
                pl.BlockSpec((in_f, hidden_p + r), const,
                             pipeline_mode=pl.Buffered(1)),                        # [W1^T|A1^T]
                pl.BlockSpec((1, hidden_p), const, pipeline_mode=pl.Buffered(1)),  # b1
                pl.BlockSpec((r, hidden_p), const, pipeline_mode=pl.Buffered(1)),  # B1^T
                pl.BlockSpec((hidden_p, out_p + r), const,
                             pipeline_mode=pl.Buffered(1)),                        # [W2^T|A2^T]
                pl.BlockSpec((1, out_p), const, pipeline_mode=pl.Buffered(1)),     # b2
                pl.BlockSpec((r, out_p), const, pipeline_mode=pl.Buffered(1)),     # B2^T
            ],
            out_specs=pl.BlockSpec((tm_eff, out_p), lambda i: (i, 0)),
        ),
        compiler_params=pltpu.CompilerParams(
            dimension_semantics=("parallel",),
            vmem_limit_bytes=vmem_limit,
        ),
        cost_estimate=cost,
    )(x2d, wcat1, b1r, bt1, wcat2, b2r, bt2)

    return out2d[:n, :out_features].reshape(B, S, out_features)


# ----------------------------------------------------------------------------- reference
def lora_mlp_reference(x, params):
    """Pure-JAX reference reproducing the PyTorch forward exactly."""
    def layer(x, w, b, a, bb):
        return x @ w.T + b + (x @ a.T) @ bb.T
    h = jax.nn.relu(layer(x, params["w1"], params["b1"], params["a1"], params["bB1"]))
    return layer(h, params["w2"], params["b2"], params["a2"], params["bB2"])


def init_params(key, in_features, hidden_features, out_features, rank, dtype=jnp.float32):
    ks = jax.random.split(key, 8)
    def uni(k, shape, fan_in):
        bound = 1.0 / jnp.sqrt(fan_in)
        return jax.random.uniform(k, shape, dtype, -bound, bound)
    # NOTE: the PyTorch module initializes lora_B to zeros; small random values are
    # used here so the LoRA matmul path is numerically exercised (deterministic init).
    return {
        "w1": uni(ks[0], (hidden_features, in_features), in_features),
        "b1": uni(ks[1], (hidden_features,), in_features),
        "a1": uni(ks[2], (rank, in_features), in_features),
        "bB1": uni(ks[3], (hidden_features, rank), rank),
        "w2": uni(ks[4], (out_features, hidden_features), hidden_features),
        "b2": uni(ks[5], (out_features,), hidden_features),
        "a2": uni(ks[6], (rank, hidden_features), hidden_features),
        "bB2": uni(ks[7], (out_features, rank), rank),
    }


if __name__ == "__main__":
    key = jax.random.PRNGKey(0)
    k_x, k_x2, k_p = jax.random.split(key, 3)

    batch, seq = 2, 8
    in_features, hidden_features, out_features, rank = 32, 64, 32, 8

    params = init_params(k_p, in_features, hidden_features, out_features, rank)

    # One-time weight preparation (outside the per-step forward / jit).
    prepped_f32 = prepare_params(params, weight_dtype=jnp.float32)
    prepped_bf16 = prepare_params(params, weight_dtype=jnp.bfloat16)   # default fast path

    fwd = jax.jit(lora_mlp_forward, static_argnames=("out_features", "tm_max"))

    # --- main check: f32 weights, even token count ---------------------------
    x = jax.random.normal(k_x, (batch, seq, in_features), jnp.float32)
    out = jax.block_until_ready(fwd(x, prepped_f32, out_features=out_features))
    ref = lora_mlp_reference(x, params)
    assert out.shape == (batch, seq, out_features)
    assert jnp.allclose(out, ref, atol=1e-5, rtol=1e-5), "mismatch vs reference (f32)"

    # --- ragged token count exercises the row-padding path (e.g. ViT's 197) --
    x_odd = jax.random.normal(k_x2, (batch, 7, in_features), jnp.float32)
    out_odd = jax.block_until_ready(fwd(x_odd, prepped_f32, out_features=out_features))
    ref_odd = lora_mlp_reference(x_odd, params)
    assert out_odd.shape == (batch, 7, out_features)
    assert jnp.allclose(out_odd, ref_odd, atol=1e-5, rtol=1e-5), "mismatch (ragged)"

    # --- bf16-weight fast path (f32 accumulation), loose tolerance -----------
    out_bf16 = jax.block_until_ready(fwd(x, prepped_bf16, out_features=out_features))
    assert out_bf16.shape == (batch, seq, out_features)
    assert jnp.max(jnp.abs(out_bf16 - ref)) < 1e-1, "bf16 path diverged"

    print("KERNEL_OK")
</pallas_src>

<mosaic_0001>
module attributes {stable_mosaic.version = 11 : i64} {
  func.func @_fused_lora_mlp_kernel(%arg0: i32, %arg1: memref<8x32xf32, #tpu.memory_space<vmem>>, %arg2: memref<32x136xf32, #tpu.memory_space<vmem>>, %arg3: memref<1x128xf32, #tpu.memory_space<vmem>>, %arg4: memref<8x128xf32, #tpu.memory_space<vmem>>, %arg5: memref<128x136xf32, #tpu.memory_space<vmem>>, %arg6: memref<1x128xf32, #tpu.memory_space<vmem>>, %arg7: memref<8x128xf32, #tpu.memory_space<vmem>>, %arg8: memref<8x128xf32, #tpu.memory_space<vmem>>) attributes {dimension_semantics = [#tpu.dimension_semantics<parallel>], iteration_bounds = array<i64: 2>, scalar_prefetch = 0 : i64, scratch_operands = 0 : i64, tpu.core_type = #tpu.core_type<tc>, window_params = [{transform_indices = @transform_0, window_bounds = array<i64: 8, 32>}, {pipeline_mode = #tpu.pipeline_mode<synchronous>, transform_indices = @transform_1, window_bounds = array<i64: 32, 136>}, {pipeline_mode = #tpu.pipeline_mode<synchronous>, transform_indices = @transform_2, window_bounds = array<i64: 1, 128>}, {pipeline_mode = #tpu.pipeline_mode<synchronous>, transform_indices = @transform_3, window_bounds = array<i64: 8, 128>}, {pipeline_mode = #tpu.pipeline_mode<synchronous>, transform_indices = @transform_4, window_bounds = array<i64: 128, 136>}, {pipeline_mode = #tpu.pipeline_mode<synchronous>, transform_indices = @transform_5, window_bounds = array<i64: 1, 128>}, {pipeline_mode = #tpu.pipeline_mode<synchronous>, transform_indices = @transform_6, window_bounds = array<i64: 8, 128>}, {transform_indices = @transform_7, window_bounds = array<i64: 8, 128>}]} {
    %c0 = arith.constant 0 : index
    %c0_0 = arith.constant 0 : index
    %0 = vector.load %arg1[%c0, %c0_0] : memref<8x32xf32, #tpu.memory_space<vmem>>, vector<8x32xf32>
    %c0_1 = arith.constant 0 : index
    %c0_2 = arith.constant 0 : index
    %1 = vector.load %arg2[%c0_1, %c0_2] : memref<32x136xf32, #tpu.memory_space<vmem>>, vector<32x136xf32>
    %cst = arith.constant dense<0.000000e+00> : vector<8x136xf32>
    %2 = tpu.matmul %0, %1, %cst {dimension_numbers = #tpu.dot_dimension_numbers<[1], [0], [0], [1], [0, 0, 1, 1], [], []>} : vector<8x32xf32>, vector<32x136xf32>, vector<8x136xf32> -> vector<8x136xf32>
    %3 = vector.extract_strided_slice %2 {offsets = [0, 0], sizes = [8, 128], strides = [1, 1]} : vector<8x136xf32> to vector<8x128xf32>
    %c0_3 = arith.constant 0 : index
    %c0_4 = arith.constant 0 : index
    %4 = vector.load %arg3[%c0_3, %c0_4] : memref<1x128xf32, #tpu.memory_space<vmem>>, vector<1x128xf32>
    %5 = vector.broadcast %4 : vector<1x128xf32> to vector<8x128xf32>
    %6 = arith.addf %3, %5 : vector<8x128xf32>
    %7 = vector.extract_strided_slice %2 {offsets = [0, 128], sizes = [8, 8], strides = [1, 1]} : vector<8x136xf32> to vector<8x8xf32>
    %c0_5 = arith.constant 0 : index
    %c0_6 = arith.constant 0 : index
    %8 = vector.load %arg4[%c0_5, %c0_6] : memref<8x128xf32, #tpu.memory_space<vmem>>, vector<8x128xf32>
    %cst_7 = arith.constant dense<0.000000e+00> : vector<8x128xf32>
    %9 = tpu.matmul %7, %8, %cst_7 {dimension_numbers = #tpu.dot_dimension_numbers<[1], [0], [0], [1], [0, 0, 1, 1], [], []>} : vector<8x8xf32>, vector<8x128xf32>, vector<8x128xf32> -> vector<8x128xf32>
    %10 = arith.addf %6, %9 : vector<8x128xf32>
    %cst_8 = arith.constant 0.000000e+00 : f32
    %11 = vector.broadcast %cst_8 : f32 to vector<8x128xf32>
    %12 = arith.maximumf %10, %11 : vector<8x128xf32>
    %c0_9 = arith.constant 0 : index
    %c0_10 = arith.constant 0 : index
    %13 = vector.load %arg5[%c0_9, %c0_10] : memref<128x136xf32, #tpu.memory_space<vmem>>, vector<128x136xf32>
    %cst_11 = arith.constant dense<0.000000e+00> : vector<8x136xf32>
    %14 = tpu.matmul %12, %13, %cst_11 {dimension_numbers = #tpu.dot_dimension_numbers<[1], [0], [0], [1], [0, 0, 1, 1], [], []>} : vector<8x128xf32>, vector<128x136xf32>, vector<8x136xf32> -> vector<8x136xf32>
    %15 = vector.extract_strided_slice %14 {offsets = [0, 0], sizes = [8, 128], strides = [1, 1]} : vector<8x136xf32> to vector<8x128xf32>
    %c0_12 = arith.constant 0 : index
    %c0_13 = arith.constant 0 : index
    %16 = vector.load %arg6[%c0_12, %c0_13] : memref<1x128xf32, #tpu.memory_space<vmem>>, vector<1x128xf32>
    %17 = vector.broadcast %16 : vector<1x128xf32> to vector<8x128xf32>
    %18 = arith.addf %15, %17 : vector<8x128xf32>
    %19 = vector.extract_strided_slice %14 {offsets = [0, 128], sizes = [8, 8], strides = [1, 1]} : vector<8x136xf32> to vector<8x8xf32>
    %c0_14 = arith.constant 0 : index
    %c0_15 = arith.constant 0 : index
    %20 = vector.load %arg7[%c0_14, %c0_15] : memref<8x128xf32, #tpu.memory_space<vmem>>, vector<8x128xf32>
    %cst_16 = arith.constant dense<0.000000e+00> : vector<8x128xf32>
    %21 = tpu.matmul %19, %20, %cst_16 {dimension_numbers = #tpu.dot_dimension_numbers<[1], [0], [0], [1], [0, 0, 1, 1], [], []>} : vector<8x8xf32>, vector<8x128xf32>, vector<8x128xf32> -> vector<8x128xf32>
    %22 = arith.addf %18, %21 : vector<8x128xf32>
    %c0_17 = arith.constant 0 : index
    %c0_18 = arith.constant 0 : index
    %23 = vector.load %arg8[%c0_17, %c0_18] : memref<8x128xf32, #tpu.memory_space<vmem>>, vector<8x128xf32>
    tpu.vector_store %arg8[%c0_17, %c0_18], %22 {strides = array<i32>} : memref<8x128xf32, #tpu.memory_space<vmem>>, vector<8x128xf32>,
    return
  }
  func.func @transform_0(%arg0: i32) -> (i32, i32) {
    %c0_i32 = arith.constant 0 : i32
    %c0_i32_0 = arith.constant 0 : i32
    return %arg0, %c0_i32 : i32, i32
  }
  func.func @transform_1(%arg0: i32) -> (i32, i32) {
    %c0_i32 = arith.constant 0 : i32
    %c0_i32_0 = arith.constant 0 : i32
    %c0_i32_1 = arith.constant 0 : i32
    return %c0_i32, %c0_i32_0 : i32, i32
  }
  func.func @transform_2(%arg0: i32) -> (i32, i32) {
    %c0_i32 = arith.constant 0 : i32
    %c0_i32_0 = arith.constant 0 : i32
    %c0_i32_1 = arith.constant 0 : i32
    return %c0_i32, %c0_i32_0 : i32, i32
  }
  func.func @transform_3(%arg0: i32) -> (i32, i32) {
    %c0_i32 = arith.constant 0 : i32
    %c0_i32_0 = arith.constant 0 : i32
    %c0_i32_1 = arith.constant 0 : i32
    return %c0_i32, %c0_i32_0 : i32, i32
  }
  func.func @transform_4(%arg0: i32) -> (i32, i32) {
    %c0_i32 = arith.constant 0 : i32
    %c0_i32_0 = arith.constant 0 : i32
    %c0_i32_1 = arith.constant 0 : i32
    return %c0_i32, %c0_i32_0 : i32, i32
  }
  func.func @transform_5(%arg0: i32) -> (i32, i32) {
    %c0_i32 = arith.constant 0 : i32
    %c0_i32_0 = arith.constant 0 : i32
    %c0_i32_1 = arith.constant 0 : i32
    return %c0_i32, %c0_i32_0 : i32, i32
  }
  func.func @transform_6(%arg0: i32) -> (i32, i32) {
    %c0_i32 = arith.constant 0 : i32
    %c0_i32_0 = arith.constant 0 : i32
    %c0_i32_1 = arith.constant 0 : i32
    return %c0_i32, %c0_i32_0 : i32, i32
  }
  func.func @transform_7(%arg0: i32) -> (i32, i32) {
    %c0_i32 = arith.constant 0 : i32
    %c0_i32_0 = arith.constant 0 : i32
    return %arg0, %c0_i32 : i32, i32
  }
}

</mosaic_0001>

<bundles_post_ra>
// kernel: lora_mlp_forward.1
= control target key start
LH: loop header
LB: loop body
LE: loop exit
PB: predicated region body
PF: predicated region fallthrough
CT: control target
= control target key end

     0   :  { %s586_s24 = smov 0   ;;  %s744_s0 = inlined_call_operand.vmem [shape: f32[16,32], index: 0, kind: input, shape index: {}]   ;;  %s745_s1 = inlined_call_operand.vmem [shape: f32[32,136], index: 1, kind: input, shape index: {}]   ;;  %s746_s2 = inlined_call_operand.vmem [shape: f32[1,128], index: 2, kind: input, shape index: {}]   ;;  %s747_s3 = inlined_call_operand.vmem [shape: f32[8,128], index: 3, kind: input, shape index: {}]   ;;  %s748_s4 = inlined_call_operand.vmem [shape: f32[128,136], index: 4, kind: input, shape index: {}]   ;;  %s749_s5 = inlined_call_operand.vmem [shape: f32[1,128], index: 5, kind: input, shape index: {}]   ;;  %s750_s6 = inlined_call_operand.vmem [shape: f32[8,128], index: 6, kind: input, shape index: {}]   ;;  %s751_s7 = inlined_call_operand.vmem [shape: f32[16,128], index: 7, kind: output, shape index: {}]  }
   0x1 LB: > { %s515_s25 = sadd.s32 4294967295, %s544_s24   ;;  %p519_p0 = scmp.ge.s32.totalorder %s544_s24, 1  ;;  %s544_s24 = sphi %s586_s24, %s17_s24  }
   0x2   : > { %p236_p1 = scmp.lt.s32.totalorder %s544_s24, 3 }
   0x4   : > { %p237_p2 = pnand %p519_p0, %p236_p1 }
   0x5   : > { %p266_p3 = scmp.lt.s32.totalorder (!%p237_p2), %s515_s25, 1 }
   0x6   : > { %240 = sbr.rel (%p237_p2) target bundleno = 536 (0x218), region = 48 }
   0xb   : > { %v282_v0 = vld [vmem:[%s745_s1 + $0x38] sm:$0xff]  ;;  %v280_v1 = vld [vmem:[%s745_s1 + $0x28] sm:$0xff]  ;;  %v281_v2 = vld [vmem:[%s745_s1 + $0x30] sm:$0xff]  ;;  %s753_s25 = smov (!%p266_p3, %s515_s25), 1  ;;  %vm283_vm0 = vcmask 261120   ;;  %vm333_vm1 = vcmask 64512  }
   0xc   : > { %319 = vmatpush.msra.mxu1 %v282_v0  ;;  %v278_v3 = vld [vmem:[%s745_s1 + $0x18] sm:$0xff]  ;;  %299 = vmatpush.msra.mxu0 %v281_v2  ;;  %v279_v4 = vld [vmem:[%s745_s1 + $0x20] sm:$0xff]  ;;  %v277_v5 = vld [vmem:[%s745_s1 + $0x10] sm:$0xff]  ;;  %s520_s17 = sshll.u32 %s753_s25, 3 }
   0xd   : > { %v276_v6 = vld [vmem:[%s745_s1 + $0x8] sm:$0xff]  ;;  %s269_s20 = scalar_lea.vmem %s744_s0, %s520_s17  ;;  %v275_v7 = vld [vmem:[%s745_s1] sm:$0xff]  ;;  %v389_v10 = vld [vmem:[%s748_s4 + $0xf0] sm:$0xff]  ;;  %s273_s16 = scalar_lea.vmem %s751_s7, %s520_s17 }
   0xe   : > { %320 = vmatpush.msra.mxu1 %v280_v1  ;;  %300 = vmatpush.msra.mxu0 %v279_v4  ;;  %v274_v8 = vld [vmem:[%s269_s20] sm:$0xff]  ;;  %v390_v11 = vld [vmem:[%s748_s4 + $0xf8] sm:$0xff]  ;;  %v388_v13 = vld [vmem:[%s748_s4 + $0xe8] sm:$0xff] }
   0xf   : > { %v332_v9 = vld [vmem:[%s747_s3] sm:$0xff]  ;;  %391 = vmatpush.msra.mxu3 %v389_v10  ;;  %411 = vmatpush.msra.mxu2 %v390_v11  ;;  %v385_v14 = vld [vmem:[%s748_s4 + $0xd0] sm:$0xff]  ;;  %v386_v15 = vld [vmem:[%s748_s4 + $0xd8] sm:$0xff] }
  0x10   : > { %321 = vmatpush.msra.mxu1 %v278_v3  ;;  %301 = vmatpush.msra.mxu0 %v277_v5  ;;  %v387_v12 = vld [vmem:[%s748_s4 + $0xe0] sm:$0xff]  ;;  %v384_v17 = vld [vmem:[%s748_s4 + $0xc8] sm:$0xff]  ;;  %v381_v18 = vld [vmem:[%s748_s4 + $0xb0] sm:$0xff] }
  0x11   : > { %392 = vmatpush.msra.mxu3 %v387_v12  ;;  %412 = vmatpush.msra.mxu2 %v388_v13  ;;  %v383_v16 = vld [vmem:[%s748_s4 + $0xc0] sm:$0xff]  ;;  %v382_v19 = vld [vmem:[%s748_s4 + $0xb8] sm:$0xff]  ;;  %v380_v21 = vld [vmem:[%s748_s4 + $0xa8] sm:$0xff] }
  0x12   : > { %322 = vmatpush.msra.mxu1 %v276_v6  ;;  %302 = vmatpush.msra.mxu0 %v275_v7  ;;  %v379_v20 = vld [vmem:[%s748_s4 + $0xa0] sm:$0xff]  ;;  %v377_v22 = vld [vmem:[%s748_s4 + $0x90] sm:$0xff]  ;;  %v378_v23 = vld [vmem:[%s748_s4 + $0x98] sm:$0xff] }
  0x13   : > { %523 = vmatmul.msk.f32.vlgmr.msra.gmra.mxu1 %vm283_vm0, %v274_v8  ;;  %522 = vmatmul.msk.f32.vlgmr.msra.gmra.mxu0 %vm283_vm0, %v274_v8  ;;  %v375_v24 = vld [vmem:[%s748_s4 + $0x80] sm:$0xff]  ;;  %v376_v25 = vld [vmem:[%s748_s4 + $0x88] sm:$0xff]  ;;  %v373_v26 = vld [vmem:[%s748_s4 + $0x70] sm:$0xff] }
  0x14   : > { %352 = vmatpush.msrb.mxu1 %v332_v9  ;;  %393 = vmatpush.msra.mxu3 %v385_v14  ;;  %v374_v27 = vld [vmem:[%s748_s4 + $0x78] sm:$0xff]  ;;  %v371_v28 = vld [vmem:[%s748_s4 + $0x60] sm:$0xff]  ;;  %v372_v29 = vld [vmem:[%s748_s4 + $0x68] sm:$0xff] }
  0x15   : > { %413 = vmatpush.msra.mxu2 %v386_v15  ;;  %v369_v30 = vld [vmem:[%s748_s4 + $0x50] sm:$0xff]  ;;  %v370_v31 = vld [vmem:[%s748_s4 + $0x58] sm:$0xff]  ;;  %v367_v32 = vld [vmem:[%s748_s4 + $0x40] sm:$0xff] }
  0x16   : > { %394 = vmatpush.msra.mxu3 %v383_v16  ;;  %v368_v33 = vld [vmem:[%s748_s4 + $0x48] sm:$0xff]  ;;  %v365_v34 = vld [vmem:[%s748_s4 + $0x30] sm:$0xff]  ;;  %v366_v35 = vld [vmem:[%s748_s4 + $0x38] sm:$0xff] }
  0x17   : > { %414 = vmatpush.msra.mxu2 %v384_v17  ;;  %v363_v37 = vld [vmem:[%s748_s4 + $0x20] sm:$0xff]  ;;  %v364_v38 = vld [vmem:[%s748_s4 + $0x28] sm:$0xff]  ;;  %v361_v39 = vld [vmem:[%s748_s4 + $0x10] sm:$0xff] }
  0x18   : > { %395 = vmatpush.msra.mxu3 %v381_v18  ;;  %v362_v40 = vld [vmem:[%s748_s4 + $0x18] sm:$0xff]  ;;  %v359_v41 = vld [vmem:[%s748_s4] sm:$0xff]  ;;  %v360_v42 = vld [vmem:[%s748_s4 + $0x8] sm:$0xff] }
  0x19   : > { %415 = vmatpush.msra.mxu2 %v382_v19  ;;  %v436_v43 = vld [vmem:[%s750_s6] sm:$0xff] }
  0x1a   : > { %396 = vmatpush.msra.mxu3 %v379_v20  ;;  %455 = vmatpush.msrb.mxu0 %v436_v43  ;;  %v536_v44 = vld [vmem:[%s746_s2] ss:$0 sm:$0xff] }
  0x1b   : > { %416 = vmatpush.msra.mxu2 %v380_v21  ;;  %v537_v51 = vld [vmem:[%s749_s5] ss:$0 sm:$0xff] }
  0x1c   : > { %397 = vmatpush.msra.mxu3 %v377_v22 }
  0x1d   : > { %417 = vmatpush.msra.mxu2 %v378_v23 }
  0x1e   : > { %398 = vmatpush.msra.mxu3 %v375_v24 }
  0x1f   : > { %418 = vmatpush.msra.mxu2 %v376_v25 }
  0x20   : > { %399 = vmatpush.msra.mxu3 %v373_v26 }
  0x21   : > { %419 = vmatpush.msra.mxu2 %v374_v27 }
  0x22   : > { %400 = vmatpush.msra.mxu3 %v371_v28 }
  0x23   : > { %420 = vmatpush.msra.mxu2 %v372_v29 }
  0x24   : > { %401 = vmatpush.msra.mxu3 %v369_v30 }
  0x25   : > { %421 = vmatpush.msra.mxu2 %v370_v31 }
  0x26   : > { %402 = vmatpush.msra.mxu3 %v367_v32 }
  0x27   : > { %422 = vmatpush.msra.mxu2 %v368_v33 }
  0x28   : > { %403 = vmatpush.msra.mxu3 %v365_v34 }
  0x29   : > { %423 = vmatpush.msra.mxu2 %v366_v35 }
  0x2a   : > { %404 = vmatpush.msra.mxu3 %v363_v37 }
  0x2b   : > { %424 = vmatpush.msra.mxu2 %v364_v38 }
  0x2c   : > { %405 = vmatpush.msra.mxu3 %v361_v39 }
  0x2d   : > { %425 = vmatpush.msra.mxu2 %v362_v40 }
  0x2e   : > { %406 = vmatpush.msra.mxu3 %v359_v41 }
  0x2f   : > { %426 = vmatpush.msra.mxu2 %v360_v42 }
  0x90   : > { %v324_v36 = vpop.f32.mrf.mxu1  ;;  %v304_v45 = vpop.f32.mrf.mxu0 }
  0x91   : > { %524 = vmatmul.msk.f32.vlgmr.msrb.gmra.mxu1 %vm333_vm1, %v324_v36  ;;  %v331_v46 = vadd.f32 %v536_v44, %v304_v45 }
 0x10e   : > { %v354_v47 = vpop.f32.mrf.mxu1 }
 0x10f   : > { %v357_v48 = vadd.f32 %v354_v47, %v331_v46 }
 0x111   : > { %v358_v49 = vmax.f32 %v357_v48, 0.0 }
 0x113   : > { %407 = vmatmul.f32.vlgmr.msra.gmra.mxu3 %v358_v49  ;;  %427 = vmatmul.f32.vlgmr.msra.gmra.mxu2 %v358_v49 }
 0x196   : > { %v428_v50 = vpop.f32.mrf.mxu2  ;;  %v408_v52 = vpop.f32.mrf.mxu3 }
 0x197   : > { %525 = vmatmul.msk.f32.vlgmr.msrb.gmra.mxu0 %vm333_vm1, %v428_v50  ;;  %v435_v53 = vadd.f32 %v537_v51, %v408_v52 }
 0x214   : > { %v457_v54 = vpop.f32.mrf.mxu0 }
 0x215   : > { %v460_v55 = vadd.f32 %v457_v54, %v435_v53 }
 0x217   : > { %461 = vst [vmem:[%s273_s16] sm:$0xff] %v460_v55 }
 0x218 PF: > { %s17_s24 = sadd.s32 1, %s544_s24  }
 0x219   : > { %p14_p4 = scmp.ge.s32.totalorder %s17_s24, 4  }
 0x21b   :  { %16 = sbr.rel (!%p14_p4) target bundleno = 1 (0x1), region = 78 }

</bundles_post_ra>
